<compile_context>
chip_gen: v6e
topology: v6e:2x2x1
jax: 0.10.0
libtpu: 0.0.40
codegen_flags: <defaults>
</compile_context>

<pallas_src>
import functools

import jax
import jax.numpy as jnp
from jax.experimental import pallas as pl
from jax.experimental.pallas import tpu as pltpu


# ---------------------------------------------------------------------------
# Small helpers
# ---------------------------------------------------------------------------
def _round_up(x: int, m: int) -> int:
    return ((x + m - 1) // m) * m


def _next_pow2(x: int) -> int:
    p = 1
    while p < x:
        p *= 2
    return p


def _vmem_budget_bytes() -> int:
    """Generation-aware VMEM budget (~48 MiB on v7x, ~96 MiB on v5e/v6e)."""
    try:
        cap = int(pltpu.get_tpu_info().vmem_capacity_bytes)
    except Exception:
        cap = 64 * 1024 * 1024  # conservative (v7x per-TC VMEM)
    return int(min((cap * 3) // 4, 112 * 1024 * 1024))


def _largest_div_tile(dim_pad: int, target: int) -> int:
    """Largest multiple of 128 <= target that divides dim_pad (dim_pad % 128 == 0)."""
    t = min(target, dim_pad)
    t = max((t // 128) * 128, 128)
    while t > 128 and dim_pad % t:
        t -= 128
    return t


# ---------------------------------------------------------------------------
# Kernels
# ---------------------------------------------------------------------------
# Single K step: grid = (M//tm, N//tn).  No accumulator, no revisit.
def _kernel_single_k_bias(x_ref, w_ref, b_ref, o_ref):
    acc = jnp.dot(x_ref[...], w_ref[...], preferred_element_type=jnp.float32)
    o_ref[...] = (acc + b_ref[...].astype(jnp.float32)).astype(o_ref.dtype)


def _kernel_single_k(x_ref, w_ref, o_ref):
    o_ref[...] = jnp.dot(
        x_ref[...], w_ref[...], preferred_element_type=jnp.float32
    ).astype(o_ref.dtype)


# Multi K step, fp32 output: accumulate directly into the resident output block.
def _kernel_multi_k_f32out_bias(x_ref, w_ref, b_ref, o_ref):
    k = pl.program_id(2)

    @pl.when(k == 0)
    def _():
        o_ref[...] = jnp.zeros_like(o_ref)

    o_ref[...] += jnp.dot(x_ref[...], w_ref[...], preferred_element_type=jnp.float32)

    @pl.when(k == pl.num_programs(2) - 1)
    def _():
        o_ref[...] += b_ref[...].astype(jnp.float32)


def _kernel_multi_k_f32out(x_ref, w_ref, o_ref):
    k = pl.program_id(2)

    @pl.when(k == 0)
    def _():
        o_ref[...] = jnp.zeros_like(o_ref)

    o_ref[...] += jnp.dot(x_ref[...], w_ref[...], preferred_element_type=jnp.float32)


# Multi K step, narrow output dtype: fp32 VMEM scratch accumulator.
def _kernel_multi_k_acc_bias(x_ref, w_ref, b_ref, o_ref, acc_ref):
    k = pl.program_id(2)

    @pl.when(k == 0)
    def _():
        acc_ref[...] = jnp.zeros_like(acc_ref)

    acc_ref[...] += jnp.dot(x_ref[...], w_ref[...], preferred_element_type=jnp.float32)

    @pl.when(k == pl.num_programs(2) - 1)
    def _():
        o_ref[...] = (acc_ref[...] + b_ref[...].astype(jnp.float32)).astype(o_ref.dtype)


def _kernel_multi_k_acc(x_ref, w_ref, o_ref, acc_ref):
    k = pl.program_id(2)

    @pl.when(k == 0)
    def _():
        acc_ref[...] = jnp.zeros_like(acc_ref)

    acc_ref[...] += jnp.dot(x_ref[...], w_ref[...], preferred_element_type=jnp.float32)

    @pl.when(k == pl.num_programs(2) - 1)
    def _():
        o_ref[...] = acc_ref[...].astype(o_ref.dtype)


# ---------------------------------------------------------------------------
# Jitted pallas_call wrapper.  All inputs are already padded so every block is
# full: x2d [M_pad, K_pad] (original dtype), w_kn [K_pad, N_pad] (compute
# dtype, e.g. bf16), bias_row [1, N_pad] fp32 or None.
# ---------------------------------------------------------------------------
@functools.partial(jax.jit, static_argnames=("tm", "tn", "tk"))
def _pallas_linear(x2d, w_kn, bias_row, *, tm, tn, tk):
    M, K = x2d.shape
    Kw, N = w_kn.shape
    assert K == Kw and M % tm == 0 and N % tn == 0 and K % tk == 0

    out_dtype = x2d.dtype
    xc = x2d.astype(w_kn.dtype)  # bf16 operands, fp32 accumulation in-kernel

    nm, nn, nk = M // tm, N // tn, K // tk
    have_bias = bias_row is not None
    out_shape = jax.ShapeDtypeStruct((M, N), out_dtype)

    if nk == 1:
        grid = (nm, nn)
        x_spec = pl.BlockSpec((tm, tk), lambda i, j: (i, 0))
        w_spec = pl.BlockSpec((tk, tn), lambda i, j: (0, j))
        o_spec = pl.BlockSpec((tm, tn), lambda i, j: (i, j))
        b_spec = pl.BlockSpec((1, tn), lambda i, j: (0, j))
        kernel = _kernel_single_k_bias if have_bias else _kernel_single_k
        scratch = []
        dim_sem = ("parallel", "parallel")
    else:
        grid = (nm, nn, nk)
        x_spec = pl.BlockSpec((tm, tk), lambda i, j, k: (i, k))
        w_spec = pl.BlockSpec((tk, tn), lambda i, j, k: (k, j))
        o_spec = pl.BlockSpec((tm, tn), lambda i, j, k: (i, j))
        b_spec = pl.BlockSpec((1, tn), lambda i, j, k: (0, j))
        if out_dtype == jnp.float32:
            kernel = _kernel_multi_k_f32out_bias if have_bias else _kernel_multi_k_f32out
            scratch = []
        else:
            kernel = _kernel_multi_k_acc_bias if have_bias else _kernel_multi_k_acc
            scratch = [pltpu.VMEM((tm, tn), jnp.float32)]
        dim_sem = ("parallel", "parallel", "arbitrary")

    ci = jnp.dtype(w_kn.dtype).itemsize
    oi = jnp.dtype(out_dtype).itemsize
    need = (
        2 * (tm * tk + tk * tn) * ci        # double-buffered x / W tiles
        + 2 * tm * tn * oi                  # output block (conservatively x2)
        + (2 * tn * 4 if have_bias else 0)  # bias row
        + (tm * tn * 4 if scratch else 0)   # fp32 scratch accumulator
    )
    vmem_limit = int(min(max(need * 3 // 2, 32 * 1024 * 1024), _vmem_budget_bytes()))

    cparams = pltpu.CompilerParams(
        dimension_semantics=dim_sem,
        vmem_limit_bytes=vmem_limit,
    )

    in_specs = [x_spec, w_spec] + ([b_spec] if have_bias else [])
    args = (xc, w_kn) + ((bias_row,) if have_bias else ())
    return pl.pallas_call(
        kernel,
        out_shape=out_shape,
        grid=grid,
        in_specs=in_specs,
        out_specs=o_spec,
        scratch_shapes=scratch,
        compiler_params=cparams,
    )(*args)


# ---------------------------------------------------------------------------
# JAX/Pallas equivalent of LinearBase (concrete replicated-linear forward)
# ---------------------------------------------------------------------------
class LinearBasePallas:
    """forward(x) -> (output, bias_or_None):
      - if skip_bias_add: output = x @ W^T,        returns (output, bias)
      - else:             output = x @ W^T + bias, returns (output, None)
    """

    def __init__(self, input_size, output_size, *, bias=True,
                 skip_bias_add=False, params_dtype=jnp.float32,
                 compute_dtype=jnp.bfloat16, tm=512, tn=512, tk=2048, key=None):
        self.input_size = input_size
        self.output_size = output_size
        self.skip_bias_add = skip_bias_add
        self.params_dtype = params_dtype
        self.compute_dtype = compute_dtype

        # Tight padding: only to hardware multiples (128 on lane-facing dims).
        self._k_pad = _round_up(input_size, 128)
        self._n_pad = _round_up(output_size, 128)

        self.tm_default = max(8, _round_up(min(tm, 512), 8))
        self.tn = _largest_div_tile(self._n_pad, tn)

        # tk: use full K when it fits the generation-aware VMEM budget,
        # otherwise the largest 128-multiple divisor of K_pad that fits.
        budget = _vmem_budget_bytes()
        ci = jnp.dtype(compute_dtype).itemsize
        oi = jnp.dtype(params_dtype).itemsize

        def _fits(tk_c, tm_c=self.tm_default, tn_c=self.tn):
            return (2 * (tm_c * tk_c + tk_c * tn_c) * ci
                    + 2 * tm_c * tn_c * oi
                    + tm_c * tn_c * 4
                    + 2 * tn_c * 4) <= budget

        if _fits(self._k_pad):
            self.tk = self._k_pad
        else:
            t = _largest_div_tile(self._k_pad, tk)
            while t > 128 and not _fits(t):
                t = _largest_div_tile(self._k_pad, t - 128)
            self.tk = t

        if key is None:
            key = jax.random.PRNGKey(0)
        k_w, k_b = jax.random.split(key)
        bound = 1.0 / (input_size ** 0.5)

        # PyTorch nn.Linear convention for the externally-visible weight.
        self.weight = jax.random.uniform(
            k_w, (output_size, input_size), dtype=params_dtype,
            minval=-bound, maxval=bound)
        if bias:
            self.bias = jax.random.uniform(
                k_b, (output_size,), dtype=params_dtype,
                minval=-bound, maxval=bound)
        else:
            self.bias = None

        # Pre-transpose + pre-pad + pre-cast to the compute dtype ONCE.
        w_kn = jnp.transpose(self.weight)  # [K, N]
        w_kn = jnp.pad(
            w_kn,
            ((0, self._k_pad - input_size), (0, self._n_pad - output_size)),
        )
        self._w_kn_pad = w_kn.astype(compute_dtype)
        if bias:
            self._bias_row_pad = jnp.pad(
                self.bias.astype(jnp.float32).reshape(1, output_size),
                ((0, 0), (0, self._n_pad - output_size)),
            )
        else:
            self._bias_row_pad = None

    def forward(self, x):
        # x: [..., input_size]  -> out: [..., output_size]
        orig_shape = x.shape
        x2d = x.reshape(-1, self.input_size)
        M = x2d.shape[0]

        # M buckets: power-of-two up to tm_default (bounds the compile cache);
        # larger M is padded to 128 and tiled with a divisor <= tm_default.
        m_aligned = max(_round_up(M, 8), 8)
        if m_aligned <= self.tm_default:
            m_pad = _next_pow2(m_aligned)
            tm = m_pad
        else:
            m_pad = _round_up(M, 128)
            tm = _largest_div_tile(m_pad, self.tm_default)

        # Keep >=2 blocks on a parallel grid axis for GEMV-like shapes (v7x
        # has two TensorCores; a 1x1 parallel grid serializes onto one).
        tn = self.tn
        if (m_pad // tm == 1 and self._n_pad // tn == 1
                and tn >= 256 and tn % 256 == 0):
            tn //= 2

        pad_m = m_pad - M
        pad_k = self._k_pad - self.input_size
        if pad_m or pad_k:
            x2d = jnp.pad(x2d, ((0, pad_m), (0, pad_k)))

        add_bias = (self.bias is not None) and (not self.skip_bias_add)
        bias_arg = self._bias_row_pad if add_bias else None

        out2d = _pallas_linear(
            x2d, self._w_kn_pad, bias_arg, tm=tm, tn=tn, tk=self.tk)

        out2d = out2d[:M, :self.output_size]
        out = out2d.reshape(*orig_shape[:-1], self.output_size)
        returned_bias = self.bias if self.skip_bias_add else None
        return out, returned_bias


if __name__ == "__main__":
    # Small shapes: batch=2, seq=8, input_size=32, output_size=64
    batch, seq, input_size, output_size = 2, 8, 32, 64

    key = jax.random.PRNGKey(0)
    k_x, k_p = jax.random.split(key)
    x = jax.random.normal(k_x, (batch, seq, input_size), dtype=jnp.float32)

    layer = LinearBasePallas(input_size, output_size, bias=True,
                             skip_bias_add=False, params_dtype=jnp.float32,
                             key=k_p)

    out, ret_bias = layer.forward(x)
    out = jax.block_until_ready(out)

    # Reference with the same bf16-operand / fp32-accumulate numerics.
    w_b = layer.weight.astype(jnp.bfloat16).astype(jnp.float32)
    x_b = x.reshape(-1, input_size).astype(jnp.bfloat16).astype(jnp.float32)
    ref = (x_b @ w_b.T + layer.bias).reshape(batch, seq, output_size)
    assert out.shape == (batch, seq, output_size)
    assert ret_bias is None
    assert jnp.allclose(out, ref, atol=1e-3, rtol=1e-3), "mismatch vs reference"

    # skip_bias_add path
    layer2 = LinearBasePallas(input_size, output_size, bias=True,
                              skip_bias_add=True, params_dtype=jnp.float32,
                              key=k_p)
    out2, ret_bias2 = layer2.forward(x)
    out2 = jax.block_until_ready(out2)
    ref2 = (x_b @ w_b.T).reshape(batch, seq, output_size)
    assert ret_bias2 is not None and ret_bias2.shape == (output_size,)
    assert jnp.allclose(out2, ref2, atol=1e-3, rtol=1e-3), "mismatch (skip_bias_add)"

    # Ragged-M path (M=20 not a multiple of 8/tm): verifies padding, no tail drop
    x3 = jax.random.normal(jax.random.PRNGKey(3), (20, input_size), jnp.float32)
    out3, _ = layer.forward(x3)
    out3 = jax.block_until_ready(out3)
    x3_b = x3.astype(jnp.bfloat16).astype(jnp.float32)
    ref3 = x3_b @ w_b.T + layer.bias
    assert out3.shape == (20, output_size)
    assert jnp.allclose(out3, ref3, atol=1e-3, rtol=1e-3), "mismatch (ragged M)"

    print("KERNEL_OK")
</pallas_src>

<mosaic_0001>
module attributes {stable_mosaic.version = 11 : i64} {
  func.func @_kernel_single_k_bias(%arg0: i32, %arg1: i32, %arg2: memref<16x128xbf16, #tpu.memory_space<vmem>>, %arg3: memref<128x128xbf16, #tpu.memory_space<vmem>>, %arg4: memref<1x128xf32, #tpu.memory_space<vmem>>, %arg5: memref<16x128xf32, #tpu.memory_space<vmem>>) attributes {dimension_semantics = [#tpu.dimension_semantics<parallel>, #tpu.dimension_semantics<parallel>], iteration_bounds = array<i64: 1, 1>, scalar_prefetch = 0 : i64, scratch_operands = 0 : i64, tpu.core_type = #tpu.core_type<tc>, window_params = [{transform_indices = @transform_0, window_bounds = array<i64: 16, 128>}, {transform_indices = @transform_1, window_bounds = array<i64: 128, 128>}, {transform_indices = @transform_2, window_bounds = array<i64: 1, 128>}, {transform_indices = @transform_3, window_bounds = array<i64: 16, 128>}]} {
    %c0 = arith.constant 0 : index
    %c0_0 = arith.constant 0 : index
    %0 = vector.load %arg2[%c0, %c0_0] : memref<16x128xbf16, #tpu.memory_space<vmem>>, vector<16x128xbf16>
    %c0_1 = arith.constant 0 : index
    %c0_2 = arith.constant 0 : index
    %1 = vector.load %arg3[%c0_1, %c0_2] : memref<128x128xbf16, #tpu.memory_space<vmem>>, vector<128x128xbf16>
    %cst = arith.constant dense<0.000000e+00> : vector<16x128xf32>
    %2 = tpu.matmul %0, %1, %cst {dimension_numbers = #tpu.dot_dimension_numbers<[1], [0], [0], [1], [0, 0, 1, 1], [], []>} : vector<16x128xbf16>, vector<128x128xbf16>, vector<16x128xf32> -> vector<16x128xf32>
    %c0_3 = arith.constant 0 : index
    %c0_4 = arith.constant 0 : index
    %3 = vector.load %arg4[%c0_3, %c0_4] : memref<1x128xf32, #tpu.memory_space<vmem>>, vector<1x128xf32>
    %4 = vector.broadcast %3 : vector<1x128xf32> to vector<16x128xf32>
    %5 = arith.addf %2, %4 : vector<16x128xf32>
    %c0_5 = arith.constant 0 : index
    %c0_6 = arith.constant 0 : index
    %6 = vector.load %arg5[%c0_5, %c0_6] : memref<16x128xf32, #tpu.memory_space<vmem>>, vector<16x128xf32>
    tpu.vector_store %arg5[%c0_5, %c0_6], %5 {strides = array<i32>} : memref<16x128xf32, #tpu.memory_space<vmem>>, vector<16x128xf32>,
    return
  }
  func.func @transform_0(%arg0: i32, %arg1: i32) -> (i32, i32) {
    %c0_i32 = arith.constant 0 : i32
    %c0_i32_0 = arith.constant 0 : i32
    return %arg0, %c0_i32 : i32, i32
  }
  func.func @transform_1(%arg0: i32, %arg1: i32) -> (i32, i32) {
    %c0_i32 = arith.constant 0 : i32
    %c0_i32_0 = arith.constant 0 : i32
    return %c0_i32, %arg1 : i32, i32
  }
  func.func @transform_2(%arg0: i32, %arg1: i32) -> (i32, i32) {
    %c0_i32 = arith.constant 0 : i32
    %c0_i32_0 = arith.constant 0 : i32
    return %c0_i32, %arg1 : i32, i32
  }
  func.func @transform_3(%arg0: i32, %arg1: i32) -> (i32, i32) {
    %c0_i32 = arith.constant 0 : i32
    return %arg0, %arg1 : i32, i32
  }
}

</mosaic_0001>

<bundles_post_ra>
// kernel: _pallas_linear.1
= control target key start
LH: loop header
LB: loop body
LE: loop exit
PB: predicated region body
PF: predicated region fallthrough
CT: control target
= control target key end

     0   :  { %8 = vsyncpa [#allocation3], 0  ;;  %s309_s0 = inlined_call_operand.vmem [shape: bf16[16,128], index: 0, kind: input, shape index: {}]   ;;  %s310_s1 = inlined_call_operand.hbm [shape: bf16[128,128], index: 1, kind: input, shape index: {}]   ;;  %s311_s2 = inlined_call_operand.vmem [shape: f32[1,128], index: 2, kind: input, shape index: {}]   ;;  %s312_s3 = inlined_call_operand.hbm [shape: f32[16,128], index: 3, kind: output, shape index: {}]  }
   0x1   :  { %9 = vsyncpa [#allocation4], 0  ;;  %s269_s12 = smov [#allocation2]  }
   0x2   :  { %s17_s13 = sshll.u32 %s269_s12, 4  ;;  %s18_s13 = int_to_ptr.vmem [resolvable:$true] %s17_s13 }
   0x3   :  { %s233_s14 = scalar_lea.vmem %s18_s13, 1024  ;;  %p238_p1 = scmp.lt.s32.totalorder %s18_s13, %s18_s13 }
   0x4   :  { %p234_p0 = scmp.ne.s32.totalorder %s18_s13, %s233_s14  ;;  %p239_p2 = scmp.lt.s32.totalorder %s233_s14, %s233_s14 }
   0x6   :  { %p240_p3 = por %p239_p2, %p238_p1 }
   0x8   :  { %p241_p4 = pnand %p240_p3, %p234_p0 }
   0xa   :  { %244 = shalt.err (!%p241_p4)
}
   0xb   :  { %s270_s15 = smov 64   ;;  %s271_s16 = smov 4  }
   0xc   :  { %23 = dma.hbm_to_vmem [thread:$0]  %s310_s1, 1024, %s18_s13, [#allocation3], %s270_s15, %s270_s15, %s271_s16  }
   0xd   :  { %265 = dma.done.wait [#allocation3], 1024  }
   0xe   :  { %266 = vsyncadd [#allocation3], 4294966272  ;;  %v272_v0 = vmov 0.0   ;;  %vm273_vm0 = vmmov 0   ;;  %v216_v1 = vld [vmem:[#allocation2 + $0x38] sm:$0xff]   ;;  %v217_v2 = vld [vmem:[#allocation2 + $0x30] sm:$0xff]  }
   0xf   :  { %188 = vmatprep.subr.bf16.mxu0 %v272_v0  ;;  %204 = vmatprep.mubr.msk.bf16.mxu0 %vm273_vm0, %v272_v0  ;;  %v218_v3 = vld [vmem:[#allocation2 + $0x28] sm:$0xff]   ;;  %v219_v4 = vld [vmem:[#allocation2 + $0x20] sm:$0xff]   ;;  %v220_v5 = vld [vmem:[#allocation2 + $0x18] sm:$0xff]   ;;  %s274_s22 = smov [#allocation5]  }
  0x10   :  { %189 = vmatpush3.bf16.msra.mxu0 %v216_v1  ;;  %v221_v6 = vld [vmem:[#allocation2 + $0x10] sm:$0xff]   ;;  %v222_v7 = vld [vmem:[#allocation2 + $0x8] sm:$0xff]   ;;  %v223_v8 = vld [vmem:[#allocation2] sm:$0xff]   ;;  %s157_s23 = sshll.u32 %s274_s22, 4  ;;  %s158_s23 = int_to_ptr.vmem [resolvable:$true] %s157_s23 }
  0x11   :  { %190 = vmatprep.subr.bf16.mxu0 %v272_v0  ;;  %v224_v9 = vld [vmem:[%s309_s0] sm:$0xff]   ;;  %s245_s24 = scalar_lea.vmem %s158_s23, 256  ;;  %p250_p6 = scmp.lt.s32.totalorder %s158_s23, %s158_s23 }
  0x12   :  { %v169_v10 = vld [vmem:[%s311_s2] ss:$0 sm:$0xff]  ;;  %p246_p5 = scmp.ne.s32.totalorder %s158_s23, %s245_s24  ;;  %p251_p7 = scmp.lt.s32.totalorder %s245_s24, %s245_s24 }
  0x14   :  { %191 = vmatpush3.bf16.msra.mxu0 %v217_v2  ;;  %p252_p8 = por %p251_p7, %p250_p6 }
  0x15   :  { %192 = vmatprep.subr.bf16.mxu0 %v272_v0 }
  0x16   :  { %p253_p9 = pnand %p252_p8, %p246_p5 }
  0x18   :  { %193 = vmatpush3.bf16.msra.mxu0 %v218_v3 }
  0x19   :  { %194 = vmatprep.subr.bf16.mxu0 %v272_v0 }
  0x1c   :  { %195 = vmatpush3.bf16.msra.mxu0 %v219_v4 }
  0x1d   :  { %196 = vmatprep.subr.bf16.mxu0 %v272_v0 }
  0x20   :  { %197 = vmatpush3.bf16.msra.mxu0 %v220_v5 }
  0x21   :  { %198 = vmatprep.subr.bf16.mxu0 %v272_v0 }
  0x24   :  { %199 = vmatpush3.bf16.msra.mxu0 %v221_v6 }
  0x25   :  { %200 = vmatprep.subr.bf16.mxu0 %v272_v0 }
  0x28   :  { %201 = vmatpush3.bf16.msra.mxu0 %v222_v7 }
  0x29   :  { %202 = vmatprep.subr.bf16.mxu0 %v272_v0 }
  0x2c   :  { %203 = vmatpush3.bf16.msra.mxu0 %v223_v8 }
  0x2f   :  { %205 = vmatmul.mubr.bf16.vlgmr.msra.gmra.mxu0 %v224_v9 }
  0xef   :  { %v143_v11 = vpop.f32.mrf.mxu0 }
  0xf0   :  { %v144_v12 = vadd.f32 %v169_v10, %v143_v11 }
  0xf1   :  { %v206_v13 = vpop.f32.mrf.mxu0 }
  0xf2   :  { %150 = vst [vmem:[#allocation5] sm:$0xff] %v144_v12 }
  0xf3   :  { %v146_v14 = vpop.f32.mrf.mxu0 }
  0xf4   :  { %v147_v15 = vadd.f32 %v169_v10, %v146_v14 }
  0xf5   :  { %v207_v16 = vpop.f32.mrf.mxu0 }
  0xf6   :  { %151 = vst [vmem:[#allocation5 + $0x8] sm:$0xff] %v147_v15 }
  0xf7   :  { %256 = shalt.err (!%p253_p9)
}
  0xf8   :  { %s275_s0 = smov 128   ;;  %s276_s2 = smov 8  }
  0xf9   :  { %163 = dma.vmem_to_hbm [thread:$0]  %s158_s23, 256, %s312_s3, [#allocation4], %s275_s0, %s275_s0, %s276_s2  }
  0xfa   :  { %267 = dma.done.wait [#allocation4], 256  }
  0xfb   :  { %268 = vsyncadd [#allocation4], 4294967040 }
  0xfc   :  { %167 = vsyncpa [#allocation3], 1 }
  0xfd   :  { %168 = vsyncpa [#allocation4], 1 }

</bundles_post_ra>
